<compile_context>
chip_gen: v7x
topology: tpu7x:2x2x1
jax: 0.10.0
libtpu: 0.0.40
codegen_flags: <defaults>
</compile_context>

<pallas_src>
import functools

import jax
import jax.numpy as jnp
from jax.experimental import pallas as pl
from jax.experimental.pallas import tpu as pltpu


def _per_buffer_budget_bytes():
    """Bytes per pipelined buffer (2 input + 2 output buffers live at once)."""
    try:
        kind = jax.devices()[0].device_kind.lower()
    except Exception:
        kind = ""
    if "v6" in kind or "v7" in kind:
        return 6 * 1024 * 1024   # 4 bufs ~= 24 MiB < 32 MiB default scoped VMEM
    return 3 * 1024 * 1024       # v5e / unknown: ~12 MiB < 16 MiB default


def _choose_tiles(R, HW, itemsize, budget):
    """Pick (tr, thw) jointly so each tile is close to `budget` bytes.

    Constraints: thw is a multiple of 128 or equals HW; tr is a multiple of
    the dtype's sublane packing or equals R.  Ragged tail blocks are fine
    (cdiv grid + masked OOB stores), so no padding is ever needed.
    """
    pack = {4: 8, 2: 16, 1: 32}.get(itemsize, 8)
    if R * HW * itemsize <= budget:            # whole array in one block
        return R, HW
    rows_fit = budget // (HW * itemsize)
    if rows_fit >= pack:                        # full-HW rows, tile rows only
        return (rows_fit // pack) * pack, HW
    # Even one packed row-group of full HW is over budget: tile HW too.
    tr = R if R < pack else pack
    if HW <= 128:
        return tr, HW
    thw = max(128, min((budget // (tr * itemsize)) // 128 * 128,
                       (HW // 128) * 128))
    return tr, thw


def _scale_kernel(w_ref, x_ref, o_ref):
    # w_ref: (tr, 1)   x_ref / o_ref: (tr, thw)  -- lane-broadcast multiply
    o_ref[...] = x_ref[...] * w_ref[...]


@functools.partial(jax.jit, static_argnames=("buf_budget",))
def scale_module_forward(x_nchw, weight, *, buf_budget=None):
    """y = weight * x with per-channel weight (scalar, (C,), or (1,C,1,1))."""
    B, C, H, W = x_nchw.shape
    HW = H * W
    R = B * C
    dtype = x_nchw.dtype
    itemsize = jnp.dtype(dtype).itemsize

    w = jnp.asarray(weight, dtype=dtype)
    if w.size == 1:
        w_col = jnp.broadcast_to(w.reshape(()), (C, 1))
    elif w.size == C:
        w_col = w.reshape(C, 1)
    else:
        # TODO(synk): weights with spatial extent (general `dims`) are outside
        # this per-channel fast path.
        raise ValueError("scale_module_forward expects a scalar or per-channel weight")
    # Per-row weight column (B*C, 1): tiny (R * itemsize bytes).
    w_rows = jnp.broadcast_to(w_col.reshape(1, C, 1), (B, C, 1)).reshape(R, 1)

    x_rows = x_nchw.reshape(R, HW)             # contiguous view; no extra HBM pass

    budget = buf_budget if buf_budget is not None else _per_buffer_budget_bytes()
    tr, thw = _choose_tiles(R, HW, itemsize, budget)
    n_r, n_hw = pl.cdiv(R, tr), pl.cdiv(HW, thw)

    # Put the larger parallel extent outermost (v7x megacore load balance).
    if n_hw > n_r:
        grid = (n_hw, n_r)
        w_map = lambda h, r: (r, 0)
        x_map = lambda h, r: (r, h)
    else:
        grid = (n_r, n_hw)
        w_map = lambda r, h: (r, 0)
        x_map = lambda r, h: (r, h)

    out = pl.pallas_call(
        _scale_kernel,
        out_shape=jax.ShapeDtypeStruct((R, HW), dtype),
        grid_spec=pltpu.PrefetchScalarGridSpec(
            num_scalar_prefetch=0,
            grid=grid,
            in_specs=[
                pl.BlockSpec((tr, 1), w_map),      # resident weight column
                pl.BlockSpec((tr, thw), x_map),    # x tile
            ],
            out_specs=pl.BlockSpec((tr, thw), x_map),
        ),
        compiler_params=pltpu.CompilerParams(
            dimension_semantics=("parallel", "parallel"),
        ),
        cost_estimate=pl.CostEstimate(
            flops=R * HW,
            transcendentals=0,
            bytes_accessed=2 * R * HW * itemsize + R * itemsize,
        ),
        # TODO(synk): expose input_output_aliases={1: 0} for callers that can
        # donate x; left off so the reference checks below stay valid.
    )(w_rows, x_rows)

    return out.reshape(B, C, H, W)


if __name__ == "__main__":
    key = jax.random.PRNGKey(0)

    # 1) module-style init (weight = ones * init_scale), small NCHW -> one block
    B, C, H, W = 2, 4, 16, 16
    weight = jnp.ones((1, C, 1, 1), dtype=jnp.float32) * 1.0
    x = jax.random.normal(key, (B, C, H, W), dtype=jnp.float32)
    y = jax.block_until_ready(scale_module_forward(x, weight))
    assert y.shape == x.shape
    assert jnp.allclose(y, weight * x, atol=1e-6, rtol=1e-6), "mismatch (test 1)"

    # 2) random per-channel weight, non-128-aligned spatial (full-dim block)
    k1, k2 = jax.random.split(key)
    w2 = jax.random.normal(k1, (1, 8, 1, 1), dtype=jnp.float32)
    x2 = jax.random.normal(k2, (2, 8, 15, 15), dtype=jnp.float32)
    y2 = jax.block_until_ready(scale_module_forward(x2, w2))
    assert jnp.allclose(y2, w2 * x2, atol=1e-6, rtol=1e-6), "mismatch (test 2)"

    # 3) forced-tiny budget -> tiled rows with a ragged last row block
    #    (R % tr != 0) and a full (non-128-aligned) HW dimension
    k3, k4 = jax.random.split(k1)
    w3 = jax.random.normal(k3, (1, 13, 1, 1), dtype=jnp.float32)
    x3 = jax.random.normal(k4, (2, 13, 19, 23), dtype=jnp.float32)
    y3 = jax.block_until_ready(scale_module_forward(x3, w3, buf_budget=16 * 1024))
    assert jnp.allclose(y3, w3 * x3, atol=1e-6, rtol=1e-6), "mismatch (test 3)"

    # 4) forced-tiny budget, small C / large HW -> lane-dense HW tiling with a
    #    ragged last HW block and HW-major (swapped) grid order
    k5, k6 = jax.random.split(k2)
    w4 = jax.random.normal(k5, (1, 3, 1, 1), dtype=jnp.float32)
    x4 = jax.random.normal(k6, (1, 3, 40, 33), dtype=jnp.float32)
    y4 = jax.block_until_ready(scale_module_forward(x4, w4, buf_budget=8 * 1024))
    assert jnp.allclose(y4, w4 * x4, atol=1e-6, rtol=1e-6), "mismatch (test 4)"

    print("KERNEL_OK")
</pallas_src>

<mosaic_0001>
module attributes {stable_mosaic.version = 11 : i64} {
  func.func @_scale_kernel(%arg0: i32, %arg1: i32, %arg2: memref<8x1xf32, #tpu.memory_space<vmem>>, %arg3: memref<8x256xf32, #tpu.memory_space<vmem>>, %arg4: memref<8x256xf32, #tpu.memory_space<vmem>>) attributes {dimension_semantics = [#tpu.dimension_semantics<parallel>, #tpu.dimension_semantics<parallel>], iteration_bounds = array<i64: 1, 1>, scalar_prefetch = 0 : i64, scratch_operands = 0 : i64, tpu.core_type = #tpu.core_type<tc>, window_params = [{transform_indices = @transform_0, window_bounds = array<i64: 8, 1>}, {transform_indices = @transform_1, window_bounds = array<i64: 8, 256>}, {transform_indices = @transform_2, window_bounds = array<i64: 8, 256>}]} {
    %c0 = arith.constant 0 : index
    %c0_0 = arith.constant 0 : index
    %0 = vector.load %arg3[%c0, %c0_0] : memref<8x256xf32, #tpu.memory_space<vmem>>, vector<8x256xf32>
    %c0_1 = arith.constant 0 : index
    %c0_2 = arith.constant 0 : index
    %1 = vector.load %arg2[%c0_1, %c0_2] : memref<8x1xf32, #tpu.memory_space<vmem>>, vector<8x1xf32>
    %2 = vector.broadcast %1 : vector<8x1xf32> to vector<8x256xf32>
    %3 = arith.mulf %0, %2 : vector<8x256xf32>
    %c0_3 = arith.constant 0 : index
    %c0_4 = arith.constant 0 : index
    %4 = vector.load %arg4[%c0_3, %c0_4] : memref<8x256xf32, #tpu.memory_space<vmem>>, vector<8x256xf32>
    tpu.vector_store %arg4[%c0_3, %c0_4], %3 {strides = array<i32>} : memref<8x256xf32, #tpu.memory_space<vmem>>, vector<8x256xf32>,
    return
  }
  func.func @transform_0(%arg0: i32, %arg1: i32) -> (i32, i32) {
    %c0_i32 = arith.constant 0 : i32
    %c0_i32_0 = arith.constant 0 : i32
    return %arg0, %c0_i32 : i32, i32
  }
  func.func @transform_1(%arg0: i32, %arg1: i32) -> (i32, i32) {
    %c0_i32 = arith.constant 0 : i32
    return %arg0, %arg1 : i32, i32
  }
  func.func @transform_2(%arg0: i32, %arg1: i32) -> (i32, i32) {
    %c0_i32 = arith.constant 0 : i32
    return %arg0, %arg1 : i32, i32
  }
}

</mosaic_0001>

<bundles_post_ra>
// kernel: scale_module_forward.1
= control target key start
LH: loop header
LB: loop body
LE: loop exit
PB: predicated region body
PF: predicated region fallthrough
CT: control target
= control target key end

     0   :  { %v29_v0 = vmov 0   ;;  %s60_s0 = inlined_call_operand.vmem [shape: f32[8,1], index: 0, kind: input, shape index: {}]   ;;  %s61_s1 = inlined_call_operand.vmem [shape: f32[8,256], index: 1, kind: input, shape index: {}]   ;;  %s62_s2 = inlined_call_operand.vmem [shape: f32[8,256], index: 2, kind: output, shape index: {}]  }
   0x1   :  { %28 = vset.pattern.permute.xlu0 %v29_v0  ;;  %v13_v1 = vld [vmem:[%s60_s0] sm:$0xff]  ;;  %v12_v3 = vld [vmem:[%s61_s1 + $0x8] sm:$0xff] }
   0x2   :  { %16 = vperm.xlu0 %28, %v13_v1   ;;  %v11_v2 = vld [vmem:[%s61_s1] sm:$0xff] }
  0x81   :  { %v17_v4 = vpop.permute.xlu0 %16 }
  0x82   :  { %v19_v5 = vmul.f32 %v17_v4, %v11_v2  ;;  %v20_v6 = vmul.f32 %v17_v4, %v12_v3 }
  0x84   :  { %21 = vst [vmem:[%s62_s2] sm:$0xff] %v19_v5  ;;  %22 = vst [vmem:[%s62_s2 + $0x8] sm:$0xff] %v20_v6 }

</bundles_post_ra>
